<compile_context>
chip_gen: v5e
topology: v5e:2x2
jax: 0.10.0
libtpu: 0.0.40
codegen_flags: <defaults>
</compile_context>

<pallas_src>
import jax
import jax.numpy as jnp
from jax.experimental import pallas as pl
from jax.experimental.pallas import tpu as pltpu

LANES = 128
DEFAULT_TILE_ROWS = 1024  # (1024, 128) f32 tile = 512 KiB


def _cdiv(a, b):
    return -(-a // b)


def _round_up(a, b):
    return _cdiv(a, b) * b


def _sublane_mult(dtype):
    # native layout packs sub-32-bit dtypes along sublanes
    return max(8, 32 // jnp.dtype(dtype).itemsize)


def _make_kernel(inv_n_real, inv_n_gen):
    def kernel(real_ref, gen_ref, out_ref, acc_r, acc_g):
        k = pl.program_id(1)

        @pl.when(k == 0)
        def _():
            acc_r[...] = jnp.zeros_like(acc_r)
            acc_g[...] = jnp.zeros_like(acc_g)

        r = real_ref[...].astype(jnp.float32)
        g = gen_ref[...].astype(jnp.float32)
        dr = 1.0 - r
        # Vector-shaped partial sums: fold (T,128) -> (T//8, 8, 128) and sum
        # over the leading axis (vreg-wise VPU adds, no XLU in the hot loop).
        acc_r[...] += (dr * dr).reshape(-1, 8, LANES).sum(axis=0)
        acc_g[...] += (g * g).reshape(-1, 8, LANES).sum(axis=0)

        @pl.when(k == pl.num_programs(1) - 1)
        def _():
            # One cross-lane/sublane reduce per parallel slice, in the epilogue.
            out_ref[0, 0] = (jnp.sum(acc_r[...]) * inv_n_real
                             + jnp.sum(acc_g[...]) * inv_n_gen)

    return kernel


def _to_slab(x, pad_value, padded_rows):
    flat = x.reshape(-1)
    total = padded_rows * LANES
    n = flat.size
    if total > n:
        flat = jnp.concatenate(
            [flat, jnp.full((total - n,), pad_value, dtype=flat.dtype)]
        )
    return flat.reshape(padded_rows, LANES)


def discriminator_loss(real, gen, *, tile_rows=DEFAULT_TILE_ROWS):
    """mean((1 - real)**2) + mean(gen**2), computed in a Pallas TPU kernel."""
    n_real = int(real.size)
    n_gen = int(gen.size)
    assert n_real > 0 and n_gen > 0

    sub = max(_sublane_mult(real.dtype), _sublane_mult(gen.dtype))
    rows_needed = _cdiv(max(n_real, n_gen), LANES)

    if rows_needed <= tile_rows:
        # Tiny-input path: one block, no pipelining overhead.
        tile_rows_eff = _round_up(rows_needed, sub)
        num_par, k_tiles = 1, 1
    else:
        tile_rows_eff = _round_up(tile_rows, sub)
        total_tiles = _cdiv(rows_needed, tile_rows_eff)
        num_par = 2 if total_tiles >= 2 else 1  # 2-way split feeds both TCs on v7x
        k_tiles = _cdiv(total_tiles, num_par)

    padded_rows = num_par * k_tiles * tile_rows_eff

    # Pad real with 1 and gen with 0: padded elements contribute exactly zero
    # to (1-real)^2 and gen^2 respectively.  This also lets real/gen have
    # different element counts while sharing one grid.
    real_s = _to_slab(real, 1, padded_rows)
    gen_s = _to_slab(gen, 0, padded_rows)

    def idx_map(p, k):
        return (p * k_tiles + k, 0)

    partials = pl.pallas_call(
        _make_kernel(1.0 / float(n_real), 1.0 / float(n_gen)),
        out_shape=jax.ShapeDtypeStruct((num_par, 1), jnp.float32),
        grid_spec=pltpu.PrefetchScalarGridSpec(
            num_scalar_prefetch=0,
            grid=(num_par, k_tiles),
            in_specs=[
                pl.BlockSpec((tile_rows_eff, LANES), idx_map),
                pl.BlockSpec((tile_rows_eff, LANES), idx_map),
            ],
            out_specs=pl.BlockSpec(
                (1, 1), lambda p, k: (p, 0),
                memory_space=pltpu.MemorySpace.SMEM,
            ),
            scratch_shapes=[
                pltpu.VMEM((8, LANES), jnp.float32),
                pltpu.VMEM((8, LANES), jnp.float32),
            ],
        ),
        compiler_params=pltpu.CompilerParams(
            dimension_semantics=("parallel", "arbitrary"),
        ),
    )(real_s, gen_s)

    # Sum per-core (per parallel slice) partial losses.
    return jnp.sum(partials)


if __name__ == "__main__":
    key = jax.random.PRNGKey(0)
    k1, k2, k3, k4 = jax.random.split(key, 4)

    # NCHW, as the PyTorch discriminator outputs would be.
    real = jax.random.normal(k1, (2, 4, 16, 16), dtype=jnp.float32)
    gen = jax.random.normal(k2, (2, 4, 16, 16), dtype=jnp.float32)

    loss = discriminator_loss(real, gen)
    loss = jax.block_until_ready(loss)

    ref = jnp.mean((1.0 - real) ** 2) + jnp.mean(gen ** 2)
    assert jnp.allclose(loss, ref, rtol=1e-5, atol=1e-6), (loss, ref)

    # Extra check: unaligned + unequal sizes exercise the padding path.
    real2 = jax.random.normal(k3, (3, 1, 7, 5), dtype=jnp.float32)
    gen2 = jax.random.normal(k4, (2, 3, 11, 3), dtype=jnp.bfloat16)
    loss2 = jax.block_until_ready(discriminator_loss(real2, gen2))
    ref2 = (jnp.mean((1.0 - real2) ** 2)
            + jnp.mean(gen2.astype(jnp.float32) ** 2))
    assert jnp.allclose(loss2, ref2, rtol=1e-5, atol=1e-6), (loss2, ref2)

    print("KERNEL_OK")
</pallas_src>

<mosaic_0001>
module attributes {stable_mosaic.version = 11 : i64} {
  func.func @kernel(%arg0: i32, %arg1: i32, %arg2: memref<16x128xf32, #tpu.memory_space<vmem>>, %arg3: memref<16x128xf32, #tpu.memory_space<vmem>>, %arg4: memref<1x1xf32, #tpu.memory_space<smem>>, %arg5: memref<8x128xf32, #tpu.memory_space<vmem>>, %arg6: memref<8x128xf32, #tpu.memory_space<vmem>>) attributes {dimension_semantics = [#tpu.dimension_semantics<parallel>, #tpu.dimension_semantics<arbitrary>], iteration_bounds = array<i64: 1, 1>, scalar_prefetch = 0 : i64, scratch_operands = 2 : i64, tpu.core_type = #tpu.core_type<tc>, window_params = [{transform_indices = @transform_0, window_bounds = array<i64: 16, 128>}, {transform_indices = @transform_1, window_bounds = array<i64: 16, 128>}, {transform_indices = @transform_2, window_bounds = array<i64: 1, 1>}]} {
    %c0_i32 = arith.constant 0 : i32
    %0 = arith.cmpi eq, %arg1, %c0_i32 : i32
    %1 = arith.extui %0 : i1 to i32
    %c0_i32_0 = arith.constant 0 : i32
    %2 = arith.cmpi ne, %1, %c0_i32_0 : i32
    scf.if %2 {
      %cst_16 = arith.constant 0.000000e+00 : f32
      %22 = vector.broadcast %cst_16 : f32 to vector<8x128xf32>
      %c0_17 = arith.constant 0 : index
      %c0_18 = arith.constant 0 : index
      %23 = vector.load %arg5[%c0_17, %c0_18] : memref<8x128xf32, #tpu.memory_space<vmem>>, vector<8x128xf32>
      tpu.vector_store %arg5[%c0_17, %c0_18], %22 {strides = array<i32>} : memref<8x128xf32, #tpu.memory_space<vmem>>, vector<8x128xf32>,
      %cst_19 = arith.constant 0.000000e+00 : f32
      %24 = vector.broadcast %cst_19 : f32 to vector<8x128xf32>
      %c0_20 = arith.constant 0 : index
      %c0_21 = arith.constant 0 : index
      %25 = vector.load %arg6[%c0_20, %c0_21] : memref<8x128xf32, #tpu.memory_space<vmem>>, vector<8x128xf32>
      tpu.vector_store %arg6[%c0_20, %c0_21], %24 {strides = array<i32>} : memref<8x128xf32, #tpu.memory_space<vmem>>, vector<8x128xf32>,
    } else {
    }
    %c0 = arith.constant 0 : index
    %c0_1 = arith.constant 0 : index
    %3 = vector.load %arg2[%c0, %c0_1] : memref<16x128xf32, #tpu.memory_space<vmem>>, vector<16x128xf32>
    %c0_2 = arith.constant 0 : index
    %c0_3 = arith.constant 0 : index
    %4 = vector.load %arg3[%c0_2, %c0_3] : memref<16x128xf32, #tpu.memory_space<vmem>>, vector<16x128xf32>
    %cst = arith.constant 1.000000e+00 : f32
    %5 = vector.broadcast %cst : f32 to vector<16x128xf32>
    %6 = arith.subf %5, %3 : vector<16x128xf32>
    %c0_4 = arith.constant 0 : index
    %c0_5 = arith.constant 0 : index
    %7 = vector.load %arg5[%c0_4, %c0_5] : memref<8x128xf32, #tpu.memory_space<vmem>>, vector<8x128xf32>
    %8 = arith.mulf %6, %6 : vector<16x128xf32>
    %9 = vector.shape_cast %8 : vector<16x128xf32> to vector<2x8x128xf32>
    %cst_6 = arith.constant dense<0.000000e+00> : vector<8x128xf32>
    %10 = vector.multi_reduction <add>, %9, %cst_6 [0] : vector<2x8x128xf32> to vector<8x128xf32>
    %11 = arith.addf %7, %10 : vector<8x128xf32>
    %c0_7 = arith.constant 0 : index
    %c0_8 = arith.constant 0 : index
    %12 = vector.load %arg5[%c0_7, %c0_8] : memref<8x128xf32, #tpu.memory_space<vmem>>, vector<8x128xf32>
    tpu.vector_store %arg5[%c0_7, %c0_8], %11 {strides = array<i32>} : memref<8x128xf32, #tpu.memory_space<vmem>>, vector<8x128xf32>,
    %c0_9 = arith.constant 0 : index
    %c0_10 = arith.constant 0 : index
    %13 = vector.load %arg6[%c0_9, %c0_10] : memref<8x128xf32, #tpu.memory_space<vmem>>, vector<8x128xf32>
    %14 = arith.mulf %4, %4 : vector<16x128xf32>
    %15 = vector.shape_cast %14 : vector<16x128xf32> to vector<2x8x128xf32>
    %cst_11 = arith.constant dense<0.000000e+00> : vector<8x128xf32>
    %16 = vector.multi_reduction <add>, %15, %cst_11 [0] : vector<2x8x128xf32> to vector<8x128xf32>
    %17 = arith.addf %13, %16 : vector<8x128xf32>
    %c0_12 = arith.constant 0 : index
    %c0_13 = arith.constant 0 : index
    %18 = vector.load %arg6[%c0_12, %c0_13] : memref<8x128xf32, #tpu.memory_space<vmem>>, vector<8x128xf32>
    tpu.vector_store %arg6[%c0_12, %c0_13], %17 {strides = array<i32>} : memref<8x128xf32, #tpu.memory_space<vmem>>, vector<8x128xf32>,
    %c0_i32_14 = arith.constant 0 : i32
    %19 = arith.cmpi eq, %arg1, %c0_i32_14 : i32
    %20 = arith.extui %19 : i1 to i32
    %c0_i32_15 = arith.constant 0 : i32
    %21 = arith.cmpi ne, %20, %c0_i32_15 : i32
    scf.if %21 {
      %c0_16 = arith.constant 0 : index
      %c0_17 = arith.constant 0 : index
      %22 = vector.load %arg5[%c0_16, %c0_17] : memref<8x128xf32, #tpu.memory_space<vmem>>, vector<8x128xf32>
      %23 = vector.shape_cast %22 : vector<8x128xf32> to vector<1x8x128xf32>
      %cst_18 = arith.constant dense<0.000000e+00> : vector<1xf32>
      %24 = vector.multi_reduction <add>, %23, %cst_18 [1, 2] : vector<1x8x128xf32> to vector<1xf32>
      %25 = vector.shape_cast %24 : vector<1xf32> to vector<1x1x1xf32>
      %26 = vector.extract %25[0, 0, 0] : f32 from vector<1x1x1xf32>
      %cst_19 = arith.constant 4.8828125E-4 : f32
      %27 = arith.mulf %26, %cst_19 : f32
      %c0_20 = arith.constant 0 : index
      %c0_21 = arith.constant 0 : index
      %28 = vector.load %arg6[%c0_20, %c0_21] : memref<8x128xf32, #tpu.memory_space<vmem>>, vector<8x128xf32>
      %29 = vector.shape_cast %28 : vector<8x128xf32> to vector<1x8x128xf32>
      %cst_22 = arith.constant dense<0.000000e+00> : vector<1xf32>
      %30 = vector.multi_reduction <add>, %29, %cst_22 [1, 2] : vector<1x8x128xf32> to vector<1xf32>
      %31 = vector.shape_cast %30 : vector<1xf32> to vector<1x1x1xf32>
      %32 = vector.extract %31[0, 0, 0] : f32 from vector<1x1x1xf32>
      %cst_23 = arith.constant 4.8828125E-4 : f32
      %33 = arith.mulf %32, %cst_23 : f32
      %34 = arith.addf %27, %33 : f32
      %c0_24 = arith.constant 0 : index
      %c0_25 = arith.constant 0 : index
      %35 = memref.load %arg4[%c0_24, %c0_25] : memref<1x1xf32, #tpu.memory_space<smem>>
      memref.store %34, %arg4[%c0_24, %c0_25] : memref<1x1xf32, #tpu.memory_space<smem>>
    } else {
    }
    return
  }
  func.func @transform_0(%arg0: i32, %arg1: i32) -> (i32, i32) {
    %c1_i32 = arith.constant 1 : i32
    %0 = arith.muli %arg0, %c1_i32 : i32
    %1 = arith.addi %0, %arg1 : i32
    %c0_i32 = arith.constant 0 : i32
    %c0_i32_0 = arith.constant 0 : i32
    return %1, %c0_i32 : i32, i32
  }
  func.func @transform_1(%arg0: i32, %arg1: i32) -> (i32, i32) {
    %c1_i32 = arith.constant 1 : i32
    %0 = arith.muli %arg0, %c1_i32 : i32
    %1 = arith.addi %0, %arg1 : i32
    %c0_i32 = arith.constant 0 : i32
    %c0_i32_0 = arith.constant 0 : i32
    return %1, %c0_i32 : i32, i32
  }
  func.func @transform_2(%arg0: i32, %arg1: i32) -> (i32, i32) {
    %c0_i32 = arith.constant 0 : i32
    %c0_i32_0 = arith.constant 0 : i32
    return %arg0, %c0_i32 : i32, i32
  }
}

</mosaic_0001>

<bundles_post_ra>
// kernel: tpu_custom_call.1
= control target key start
LH: loop header
LB: loop body
LE: loop exit
PB: predicated region body
PF: predicated region fallthrough
CT: control target
= control target key end

     0   :  { %7 = vsyncpa [#allocation5], 0  ;;  %s229_s0 = inlined_call_operand.hbm [shape: f32[16,128], index: 0, kind: input, shape index: {}]   ;;  %s230_s1 = inlined_call_operand.hbm [shape: f32[16,128], index: 1, kind: input, shape index: {}]   ;;  %s231_s2 = inlined_call_operand.hbm [shape: f32[1,1], index: 2, kind: output, shape index: {}]  }
   0x1   :  { %8 = vsyncpa [#allocation8], 0 }
   0x2   :  { %9 = vsyncpa [#allocation6], 0  ;;  %s18_s11 = sshll.u32 %s229_s0, 4  ;;  %s200_s12 = smov [#allocation4]   ;;  %s19_s11 = int_to_ptr.hbm [resolvable:$true] %s18_s11 }
   0x3   :  { %s20_s13 = sshll.u32 %s200_s12, 4  ;;  %s35_s16 = sshll.u32 %s230_s1, 4  ;;  %s21_s13 = int_to_ptr.vmem [resolvable:$true] %s20_s13  ;;  %s36_s16 = int_to_ptr.hbm [resolvable:$true] %s35_s16 }
   0x4   :  { %s201_s17 = smov 128   ;;  %s202_s18 = smov 8  }
   0x5   :  { %26 = dma.hbm_to_vmem [thread:$0]  %s19_s11, 256, %s21_s13, [#allocation5], %s201_s17, %s201_s17, %s202_s18  }
   0x6   :  { %s203_s19 = smov [#allocation7]  }
   0x7   :  { %s37_s20 = sshll.u32 %s203_s19, 4  ;;  %s38_s20 = int_to_ptr.vmem [resolvable:$true] %s37_s20 }
   0x8   :  { %43 = dma.hbm_to_vmem [thread:$0]  %s36_s16, 256, %s38_s20, [#allocation8], %s201_s17, %s201_s17, %s202_s18  }
   0x9   :  { %194 = dma.done.wait [#allocation5], 256  }
   0xa   :  { %195 = vsyncadd [#allocation5], 4294967040 }
   0xb   :  { %196 = dma.done.wait [#allocation8], 256  }
   0xc   :  { %197 = vsyncadd [#allocation8], 4294967040  ;;  %v62_v0 = vld [vmem:[#allocation4] sm:$0xff]  ;;  %v63_v1 = vld [vmem:[#allocation4 + $0x8] sm:$0xff]  ;;  %s113_s22 = sshll.u32 %s231_s2, 4  ;;  %s204_s27 = smov [#allocation9]   ;;  %s114_s22 = int_to_ptr.hbm [resolvable:$true] %s113_s22 }
   0xd   :  { %v66_v2 = vsub.f32 1.0, %v62_v0  ;;  %v67_v3 = vsub.f32 1.0, %v63_v1  ;;  %v64_v6 = vld [vmem:[#allocation7] sm:$0xff]  ;;  %v65_v7 = vld [vmem:[#allocation7 + $0x8] sm:$0xff] }
   0xe   :  { %v75_v9 = vmul.f32 %v64_v6, %v64_v6  ;;  %v76_v10 = vmul.f32 %v65_v7, %v65_v7 }
   0xf   :  { %v69_v4 = vmul.f32 %v66_v2, %v66_v2  ;;  %v70_v5 = vmul.f32 %v67_v3, %v67_v3 }
  0x10   :  { %v77_v11 = vadd.f32 %v76_v10, %v75_v9 }
  0x11   :  { %v71_v8 = vadd.f32 %v70_v5, %v69_v4 }
  0x13   :  { %84 = vadd.xlane.f32.xlu0 %v71_v8 }
  0x1b   :  { %95 = vadd.xlane.f32.xlu0 %v77_v11 }
  0x86   :  { %v85_v12 = vpop.xlane.xlu0 %84 }
  0x87   :  { %v86_v13 = vrot.slane %v85_v12, 4 }
  0x89   :  { %v87_v14 = vadd.f32 %v86_v13, %v85_v12 }
  0x8b   :  { %v88_v15 = vrot.slane %v87_v14, 2 }
  0x8d   :  { %v89_v16 = vadd.f32 %v88_v15, %v87_v14 }
  0x8e   :  { %v96_v17 = vpop.xlane.xlu0 %95 }
  0x8f   :  { %v97_v18 = vrot.slane %v96_v17, 4  ;;  %v90_v19 = vrot.slane %v89_v16, 1 }
  0x91   :  { %v98_v20 = vadd.f32 %v97_v18, %v96_v17  ;;  %v91_v21 = vadd.f32 %v90_v19, %v89_v16 }
  0x93   :  { %v99_v22 = vrot.slane %v98_v20, 2  ;;  %125 = vpush %v91_v21 }
  0x95   :  { %v100_v23 = vadd.f32 %v99_v22, %v98_v20 }
  0x97   :  { %v101_v24 = vrot.slane %v100_v23, 1 }
  0x99   :  { %v102_v25 = vadd.f32 %v101_v24, %v100_v23 }
  0x9b   :  { %127 = vpush %v102_v25 }
  0xc4   :  { %s126_s0 = spop %125 }
  0xc5   :  { %s93_s23 = smul.f32 0.00048828125, %s126_s0 }
  0xcc   :  { %s128_s24 = spop %127 }
  0xcd   :  { %s104_s25 = smul.f32 0.00048828125, %s128_s24 }
  0xcf   :  { %s105_s26 = sadd.f32 %s104_s25, %s93_s23 }
  0xd1   :  { %107 = sst [smem:[#allocation9]] %s105_s26 }
  0xd2   :  { %116 = dma.smem_to_hbm %s204_s27, 16, %s114_s22, [#allocation6]  }
  0xd3   :  { %198 = dma.done.wait [#allocation6], 16  }
  0xd4   :  { %199 = vsyncadd [#allocation6], 4294967280 }
  0xd5   :  { %121 = sfence }
  0xd6   :  { %122 = vsyncpa [#allocation5], 1 }
  0xd7   :  { %123 = vsyncpa [#allocation8], 1 }
  0xd8   :  { %124 = vsyncpa [#allocation6], 1 }

</bundles_post_ra>
